<compile_context>
chip_gen: v7x
topology: tpu7x:2x2x1
jax: 0.10.0
libtpu: 0.0.40
codegen_flags: <defaults>
</compile_context>

<pallas_src>
import functools
from math import sqrt

import jax
import jax.numpy as jnp
from jax.experimental import pallas as pl
from jax.experimental.pallas import tpu as pltpu

# ----------------------------- config ---------------------------------------
BATCH        = 2
SEQ_LEN      = 16
INPUT_DIM    = 4
HIDDEN_DIMS  = [24, 32]          # hidden_dims[0] divisible by len(KERNEL_SIZES)
OUTPUT_DIM   = 6
KERNEL_SIZES = [3, 5, 7]
BN_EPS       = 1e-5

MAX_K   = max(KERNEL_SIZES)
MAX_PAD = MAX_K // 2
H0      = HIDDEN_DIMS[0]         # 24
H1      = HIDDEN_DIMS[1]         # 32
KC      = MAX_K * INPUT_DIM      # 28 (im2col contraction, valid part)
LANES   = 128
H0P     = 32                     # H0 padded to a 32-lane tile
H1P     = 32                     # H1 (already 32)

# Packed-parameter layout: single (PACK_ROWS, 128) f32 buffer, 8-aligned rows.
WC_ROW    = 0                    # rows [  0,128): fused conv W, (128, 32) tile
W1_ROW    = 128                  # rows [128,160): mlp W1^T,     (32, 32) tile
W2_ROW    = 160                  # rows [160,192): mlp W2^T,     (32,128) tile
VEC_ROW   = 192                  # rows [192,200): bias / gamma / beta rows
PACK_ROWS = 200


# ----------------------------- kernel ---------------------------------------
def make_kernel(batch, seq_len, out_rows):
    def kernel(patches_ref, p_ref, out_ref):
        # ---- unpack parameters (one operand, static 8-aligned slices) --------
        wc  = p_ref[WC_ROW:WC_ROW + LANES, 0:H0P]        # (128, 32)
        w1  = p_ref[W1_ROW:W1_ROW + H0P, 0:H1P]          # (32, 32)
        w2  = p_ref[W2_ROW:W2_ROW + H1P, :]              # (32, 128)
        vec = p_ref[VEC_ROW:VEC_ROW + 8, :]              # (8, 128)
        bc    = vec[0:1, 0:H0P]
        gamma = vec[1:2, 0:H0P]
        beta  = vec[2:3, 0:H0P]
        b1    = vec[3:4, 0:H1P]
        b2    = vec[4:5, :]

        # ---- fused 3-branch conv: ONE matmul on pre-built lane-dense patches -
        conv = jnp.dot(patches_ref[...], wc,
                       preferred_element_type=jnp.float32) + bc
        conv = jnp.maximum(conv, 0.0)                    # (B*S_pad, 32), ReLU

        # ---- adaptive_max_pool1d(., 1): per-batch sublane max, no reshape ----
        pooled = jnp.concatenate(
            [jnp.max(conv[b * seq_len:(b + 1) * seq_len, :],
                     axis=0, keepdims=True)
             for b in range(batch)], axis=0)             # (B, 32)

        # ---- BatchNorm1d, training-mode forward (batch stats, biased var) ----
        mean = jnp.mean(pooled, axis=0, keepdims=True)
        var  = jnp.mean((pooled - mean) ** 2, axis=0, keepdims=True)
        bn   = (pooled - mean) * jax.lax.rsqrt(var + BN_EPS) * gamma + beta

        # ---- MLP: Linear -> ReLU -> Linear; lane-dense (out_rows,128) store --
        h = jnp.maximum(
            jnp.dot(bn, w1, preferred_element_type=jnp.float32) + b1, 0.0)
        h = jnp.concatenate(
            [h, jnp.zeros((out_rows - batch, H1P), jnp.float32)], axis=0)
        out_ref[...] = (
            jnp.dot(h, w2, preferred_element_type=jnp.float32) + b2)

    return kernel


# ----------------------------- one-time param packing ------------------------
def prepare_params(params):
    """Pack all parameters into one (PACK_ROWS, 128) lane-padded f32 buffer.

    Conv branches are fused offline: each (OC, Cin, k) weight is transposed to
    (k, Cin, OC), zero-padded to 7 centered taps, concatenated on OC and
    flattened to a (28, H0) im2col weight placed in a 128-row contraction tile
    (rows >= 28 are zero, matching the zero-padded patch lanes).
    """
    w_taps, biases = [], []
    for k in KERNEL_SIZES:
        w = jnp.transpose(params[f"conv{k}_w"], (2, 1, 0))      # (k, Cin, oc)
        pad = (MAX_K - k) // 2
        w = jnp.pad(w, ((pad, pad), (0, 0), (0, 0)))            # (7, Cin, oc)
        w_taps.append(w)
        biases.append(params[f"conv{k}_b"])
    wc = jnp.concatenate(w_taps, axis=-1).reshape(KC, H0)       # (28, 24)
    bc = jnp.concatenate(biases)                                # (24,)

    p = jnp.zeros((PACK_ROWS, LANES), jnp.float32)
    p = p.at[WC_ROW:WC_ROW + KC, 0:H0].set(wc)
    p = p.at[W1_ROW:W1_ROW + H0, 0:H1].set(params["mlp_w1"].T)
    p = p.at[W2_ROW:W2_ROW + H1, 0:OUTPUT_DIM].set(params["mlp_w2"].T)
    p = p.at[VEC_ROW + 0, 0:H0].set(bc)
    p = p.at[VEC_ROW + 1, 0:H0].set(params["bn_gamma"])
    p = p.at[VEC_ROW + 2, 0:H0].set(params["bn_beta"])
    p = p.at[VEC_ROW + 3, 0:H1].set(params["mlp_b1"])
    p = p.at[VEC_ROW + 4, 0:OUTPUT_DIM].set(params["mlp_b2"])
    return p


# ----------------------------- wrapper ---------------------------------------
def _build_patches(x):
    """Offline im2col: (B, S, Cin) -> lane-dense (pad8(B*S), 128) patches."""
    b, s, cin = x.shape
    xp = jnp.pad(x, ((0, 0), (MAX_PAD, MAX_PAD), (0, 0)))
    cols = [xp[:, dt:dt + s, :] for dt in range(MAX_K)]
    patches = jnp.concatenate(cols, axis=-1).reshape(b * s, MAX_K * cin)
    rows_pad = -(-(b * s) // 8) * 8
    return jnp.pad(patches,
                   ((0, rows_pad - b * s), (0, LANES - MAX_K * cin)))


@jax.jit
def cnn_estimator_forward(x, packed_params):
    """x: (batch, seq_len, input_dim) f32 -> (batch, output_dim) f32."""
    b, s, _ = x.shape
    patches = _build_patches(x.astype(jnp.float32))
    out_rows = -(-b // 8) * 8                         # sublane-pad output rows
    out = pl.pallas_call(
        make_kernel(b, s, out_rows),
        out_shape=jax.ShapeDtypeStruct((out_rows, LANES), jnp.float32),
        in_specs=[pl.BlockSpec(memory_space=pltpu.MemorySpace.VMEM),
                  pl.BlockSpec(memory_space=pltpu.MemorySpace.VMEM)],
        out_specs=pl.BlockSpec(memory_space=pltpu.MemorySpace.VMEM),
    )(patches, packed_params)
    return out[0:b, 0:OUTPUT_DIM]


# ----------------------------- reference (plain JAX) -------------------------
def reference_forward(x, params):
    xt = jnp.transpose(x, (0, 2, 1))                   # (B, Cin, S)  (NCL)
    results = []
    for k in KERNEL_SIZES:
        w, bias = params[f"conv{k}_w"], params[f"conv{k}_b"]
        y = jax.lax.conv_general_dilated(
            xt, w, window_strides=(1,), padding=[(k // 2, k // 2)],
            dimension_numbers=("NCH", "OIH", "NCH"))
        y = jax.nn.relu(y + bias[None, :, None])
        results.append(jnp.max(y, axis=2))
    combined = jnp.concatenate(results, axis=1)
    mean = jnp.mean(combined, axis=0, keepdims=True)
    var = jnp.mean((combined - mean) ** 2, axis=0, keepdims=True)
    bn = (combined - mean) / jnp.sqrt(var + BN_EPS)
    bn = bn * params["bn_gamma"][None] + params["bn_beta"][None]
    h = jax.nn.relu(bn @ params["mlp_w1"].T + params["mlp_b1"])
    return h @ params["mlp_w2"].T + params["mlp_b2"]


# ----------------------------- param init ------------------------------------
def init_params(key):
    params = {}
    branch_ch = H0 // len(KERNEL_SIZES)
    keys = iter(jax.random.split(key, 2 * len(KERNEL_SIZES) + 4))
    for k in KERNEL_SIZES:
        bound = 1.0 / sqrt(INPUT_DIM * k)
        params[f"conv{k}_w"] = jax.random.uniform(
            next(keys), (branch_ch, INPUT_DIM, k), jnp.float32, -bound, bound)
        params[f"conv{k}_b"] = jax.random.uniform(
            next(keys), (branch_ch,), jnp.float32, -bound, bound)
    params["bn_gamma"] = jnp.ones((H0,), jnp.float32)
    params["bn_beta"] = jnp.zeros((H0,), jnp.float32)
    b1 = 1.0 / sqrt(H0)
    params["mlp_w1"] = jax.random.uniform(
        next(keys), (H1, H0), jnp.float32, -b1, b1)
    params["mlp_b1"] = jax.random.uniform(
        next(keys), (H1,), jnp.float32, -b1, b1)
    b2 = 1.0 / sqrt(H1)
    params["mlp_w2"] = jax.random.uniform(
        next(keys), (OUTPUT_DIM, H1), jnp.float32, -b2, b2)
    params["mlp_b2"] = jax.random.uniform(
        next(keys), (OUTPUT_DIM,), jnp.float32, -b2, b2)
    return params


# ----------------------------- main -------------------------------------------
if __name__ == "__main__":
    key = jax.random.PRNGKey(0)
    pkey, xkey = jax.random.split(key)
    params = init_params(pkey)
    x = jax.random.normal(xkey, (BATCH, SEQ_LEN, INPUT_DIM), jnp.float32)

    # One-time parameter preparation (branch fusion / transpose / packing),
    # hoisted out of the per-inference path.
    packed = jax.block_until_ready(prepare_params(params))

    out = jax.block_until_ready(cnn_estimator_forward(x, packed))

    ref = reference_forward(x, params)
    assert out.shape == (BATCH, OUTPUT_DIM), out.shape
    assert jnp.allclose(out, ref, atol=5e-3, rtol=5e-3), (
        f"max abs diff = {jnp.max(jnp.abs(out - ref))}")

    print("KERNEL_OK")
</pallas_src>

<mosaic_0001>
module attributes {stable_mosaic.version = 11 : i64} {
  func.func @kernel(%arg0: memref<32x128xf32, #tpu.memory_space<vmem>>, %arg1: memref<200x128xf32, #tpu.memory_space<vmem>>, %arg2: memref<8x128xf32, #tpu.memory_space<vmem>>) attributes {dimension_semantics = [], scalar_prefetch = 0 : i64, scratch_operands = 0 : i64, tpu.core_type = #tpu.core_type<tc>} {
    %c0 = arith.constant 0 : index
    %c0_0 = arith.constant 0 : index
    %0 = vector.load %arg1[%c0, %c0_0] : memref<200x128xf32, #tpu.memory_space<vmem>>, vector<128x32xf32>
    %c128 = arith.constant 128 : index
    %c0_1 = arith.constant 0 : index
    %1 = vector.load %arg1[%c128, %c0_1] : memref<200x128xf32, #tpu.memory_space<vmem>>, vector<32x32xf32>
    %c160 = arith.constant 160 : index
    %c0_2 = arith.constant 0 : index
    %2 = vector.load %arg1[%c160, %c0_2] : memref<200x128xf32, #tpu.memory_space<vmem>>, vector<32x128xf32>
    %c192 = arith.constant 192 : index
    %c0_3 = arith.constant 0 : index
    %3 = vector.load %arg1[%c192, %c0_3] : memref<200x128xf32, #tpu.memory_space<vmem>>, vector<8x128xf32>
    %4 = vector.extract_strided_slice %3 {offsets = [0, 0], sizes = [1, 32], strides = [1, 1]} : vector<8x128xf32> to vector<1x32xf32>
    %5 = vector.extract_strided_slice %3 {offsets = [1, 0], sizes = [1, 32], strides = [1, 1]} : vector<8x128xf32> to vector<1x32xf32>
    %6 = vector.extract_strided_slice %3 {offsets = [2, 0], sizes = [1, 32], strides = [1, 1]} : vector<8x128xf32> to vector<1x32xf32>
    %7 = vector.extract_strided_slice %3 {offsets = [3, 0], sizes = [1, 32], strides = [1, 1]} : vector<8x128xf32> to vector<1x32xf32>
    %8 = vector.extract_strided_slice %3 {offsets = [4, 0], sizes = [1, 128], strides = [1, 1]} : vector<8x128xf32> to vector<1x128xf32>
    %c0_4 = arith.constant 0 : index
    %c0_5 = arith.constant 0 : index
    %9 = vector.load %arg0[%c0_4, %c0_5] : memref<32x128xf32, #tpu.memory_space<vmem>>, vector<32x128xf32>
    %cst = arith.constant dense<0.000000e+00> : vector<32x32xf32>
    %10 = tpu.matmul %9, %0, %cst {dimension_numbers = #tpu.dot_dimension_numbers<[1], [0], [0], [1], [0, 0, 1, 1], [], []>} : vector<32x128xf32>, vector<128x32xf32>, vector<32x32xf32> -> vector<32x32xf32>
    %11 = vector.broadcast %4 : vector<1x32xf32> to vector<32x32xf32>
    %12 = arith.addf %10, %11 : vector<32x32xf32>
    %cst_6 = arith.constant 0.000000e+00 : f32
    %13 = vector.broadcast %cst_6 : f32 to vector<32x32xf32>
    %14 = arith.maximumf %12, %13 : vector<32x32xf32>
    %15 = vector.extract_strided_slice %14 {offsets = [0, 0], sizes = [16, 32], strides = [1, 1]} : vector<32x32xf32> to vector<16x32xf32>
    %cst_7 = arith.constant dense<0xFF800000> : vector<32xf32>
    %16 = vector.multi_reduction <maximumf>, %15, %cst_7 [0] : vector<16x32xf32> to vector<32xf32>
    %17 = vector.shape_cast %16 : vector<32xf32> to vector<1x32xf32>
    %18 = vector.extract_strided_slice %14 {offsets = [16, 0], sizes = [16, 32], strides = [1, 1]} : vector<32x32xf32> to vector<16x32xf32>
    %cst_8 = arith.constant dense<0xFF800000> : vector<32xf32>
    %19 = vector.multi_reduction <maximumf>, %18, %cst_8 [0] : vector<16x32xf32> to vector<32xf32>
    %20 = vector.shape_cast %19 : vector<32xf32> to vector<1x32xf32>
    %21 = tpu.concatenate %17, %20 in 0 : vector<1x32xf32>, vector<1x32xf32> -> vector<2x32xf32>
    %cst_9 = arith.constant dense<0.000000e+00> : vector<32xf32>
    %22 = vector.multi_reduction <add>, %21, %cst_9 [0] : vector<2x32xf32> to vector<32xf32>
    %23 = vector.shape_cast %22 : vector<32xf32> to vector<1x32xf32>
    %cst_10 = arith.constant 2.000000e+00 : f32
    %24 = vector.broadcast %cst_10 : f32 to vector<1x32xf32>
    %25 = arith.divf %23, %24 : vector<1x32xf32>
    %26 = vector.broadcast %25 : vector<1x32xf32> to vector<2x32xf32>
    %27 = arith.subf %21, %26 : vector<2x32xf32>
    %28 = arith.mulf %27, %27 : vector<2x32xf32>
    %cst_11 = arith.constant dense<0.000000e+00> : vector<32xf32>
    %29 = vector.multi_reduction <add>, %28, %cst_11 [0] : vector<2x32xf32> to vector<32xf32>
    %30 = vector.shape_cast %29 : vector<32xf32> to vector<1x32xf32>
    %cst_12 = arith.constant 2.000000e+00 : f32
    %31 = vector.broadcast %cst_12 : f32 to vector<1x32xf32>
    %32 = arith.divf %30, %31 : vector<1x32xf32>
    %33 = vector.broadcast %25 : vector<1x32xf32> to vector<2x32xf32>
    %34 = arith.subf %21, %33 : vector<2x32xf32>
    %cst_13 = arith.constant 9.99999974E-6 : f32
    %35 = vector.broadcast %cst_13 : f32 to vector<1x32xf32>
    %36 = arith.addf %32, %35 : vector<1x32xf32>
    %37 = math.rsqrt %36 : vector<1x32xf32>
    %38 = vector.broadcast %37 : vector<1x32xf32> to vector<2x32xf32>
    %39 = arith.mulf %34, %38 : vector<2x32xf32>
    %40 = vector.broadcast %5 : vector<1x32xf32> to vector<2x32xf32>
    %41 = arith.mulf %39, %40 : vector<2x32xf32>
    %42 = vector.broadcast %6 : vector<1x32xf32> to vector<2x32xf32>
    %43 = arith.addf %41, %42 : vector<2x32xf32>
    %cst_14 = arith.constant dense<0.000000e+00> : vector<2x32xf32>
    %44 = tpu.matmul %43, %1, %cst_14 {dimension_numbers = #tpu.dot_dimension_numbers<[1], [0], [0], [1], [0, 0, 1, 1], [], []>} : vector<2x32xf32>, vector<32x32xf32>, vector<2x32xf32> -> vector<2x32xf32>
    %45 = vector.broadcast %7 : vector<1x32xf32> to vector<2x32xf32>
    %46 = arith.addf %44, %45 : vector<2x32xf32>
    %cst_15 = arith.constant 0.000000e+00 : f32
    %47 = vector.broadcast %cst_15 : f32 to vector<2x32xf32>
    %48 = arith.maximumf %46, %47 : vector<2x32xf32>
    %cst_16 = arith.constant 0.000000e+00 : f32
    %49 = vector.broadcast %cst_16 : f32 to vector<6x32xf32>
    %50 = tpu.concatenate %48, %49 in 0 : vector<2x32xf32>, vector<6x32xf32> -> vector<8x32xf32>
    %cst_17 = arith.constant dense<0.000000e+00> : vector<8x128xf32>
    %51 = tpu.matmul %50, %2, %cst_17 {dimension_numbers = #tpu.dot_dimension_numbers<[1], [0], [0], [1], [0, 0, 1, 1], [], []>} : vector<8x32xf32>, vector<32x128xf32>, vector<8x128xf32> -> vector<8x128xf32>
    %52 = vector.broadcast %8 : vector<1x128xf32> to vector<8x128xf32>
    %53 = arith.addf %51, %52 : vector<8x128xf32>
    %c0_18 = arith.constant 0 : index
    %c0_19 = arith.constant 0 : index
    %54 = vector.load %arg2[%c0_18, %c0_19] : memref<8x128xf32, #tpu.memory_space<vmem>>, vector<8x128xf32>
    tpu.vector_store %arg2[%c0_18, %c0_19], %53 {strides = array<i32>} : memref<8x128xf32, #tpu.memory_space<vmem>>, vector<8x128xf32>,
    return
  }
}

</mosaic_0001>

<bundles_post_ra>
// kernel: cnn_estimator_forward.1
= control target key start
LH: loop header
LB: loop body
LE: loop exit
PB: predicated region body
PF: predicated region fallthrough
CT: control target
= control target key end

     0   :  { %v490_v31 = vmov 0.0|0.0   ;;  %vm491_vm0 = vmmov 0   ;;  %v492_v34 = vmov 0.0   ;;  %v40_v36 = vlaneseq  ;;  %s626_s1 = inlined_call_operand.vmem [shape: f32[200,128], index: 1, kind: input, shape index: {}]   ;;  %s627_s0 = inlined_call_operand.vmem [shape: f32[32,128], index: 0, kind: input, shape index: {}]   ;;  %s628_s2 = inlined_call_operand.vmem [shape: f32[8,128], index: 2, kind: output, shape index: {}]  }
   0x1   :  { %v11_v0 = vld [vmem:[%s626_s1] sm:$0xff]  ;;  %v12_v1 = vld [vmem:[%s626_s1 + $0x8] sm:$0xff]  ;;  %v13_v2 = vld [vmem:[%s626_s1 + $0x10] sm:$0xff]  ;;  %473 = vmatprep.subr.bf16.mxu1 %v490_v31  ;;  %427 = vmatprep.mubr.msk.f32.mxu1 %vm491_vm0, %v492_v34  ;;  %vm133_vm1 = vcmask 261120   ;;  %vm152_vm2 = vcmask 1040384   ;;  %vm154_vm3 = vcmask 254976  }
   0x2   :  { %v441_v3 = vpack.c.bf16 %v12_v1, %v11_v0  ;;  %v14_v4 = vld [vmem:[%s626_s1 + $0x18] sm:$0xff]  ;;  %v15_v6 = vld [vmem:[%s626_s1 + $0x20] sm:$0xff]  ;;  %v16_v7 = vld [vmem:[%s626_s1 + $0x28] sm:$0xff]  ;;  %v585_v37 = vshrl.u32 %v40_v36, 7  ;;  %vm265_vm4 = vcmask 1041408  }
   0x3   :  { %v445_v5 = vpack.c.bf16 %v14_v4, %v13_v2  ;;  %v449_v8 = vpack.c.bf16 %v16_v7, %v15_v6  ;;  %v36_v9 = vld [vmem:[%s627_s0] sm:$0xff]  ;;  %v17_v10 = vld [vmem:[%s626_s1 + $0x30] sm:$0xff]  ;;  %v18_v11 = vld [vmem:[%s626_s1 + $0x38] sm:$0xff] }
   0x4   :  { %442 = vmatprep.subr.bf16.mxu0 %v441_v3  ;;  %413 = vmatprep.mubr.f32.mxu0 %v36_v9  ;;  %v453_v12 = vpack.c.bf16 %v18_v11, %v17_v10  ;;  %v19_v13 = vld [vmem:[%s626_s1 + $0x40] sm:$0xff]  ;;  %v20_v14 = vld [vmem:[%s626_s1 + $0x48] sm:$0xff]  ;;  %v21_v16 = vld [vmem:[%s626_s1 + $0x50] sm:$0xff]  ;;  %v42_v38 = vsub.s32 0, %v585_v37 }
   0x5   :  { %444 = vmatpush3.bf16.msra.mxu0 %v441_v3  ;;  %v457_v15 = vpack.c.bf16 %v20_v14, %v19_v13  ;;  %v22_v17 = vld [vmem:[%s626_s1 + $0x58] sm:$0xff]  ;;  %v23_v19 = vld [vmem:[%s626_s1 + $0x60] sm:$0xff]  ;;  %v24_v20 = vld [vmem:[%s626_s1 + $0x68] sm:$0xff] }
   0x6   :  { %446 = vmatprep.subr.bf16.mxu0 %v445_v5  ;;  %v461_v18 = vpack.c.bf16 %v22_v17, %v21_v16  ;;  %v465_v21 = vpack.c.bf16 %v24_v20, %v23_v19  ;;  %v25_v22 = vld [vmem:[%s626_s1 + $0x70] sm:$0xff]  ;;  %v26_v23 = vld [vmem:[%s626_s1 + $0x78] sm:$0xff]  ;;  %v37_v25 = vld [vmem:[%s627_s0 + $0x8] sm:$0xff] }
   0x7   :  { %v469_v24 = vpack.c.bf16 %v26_v23, %v25_v22  ;;  %v38_v26 = vld [vmem:[%s627_s0 + $0x10] sm:$0xff]  ;;  %v39_v27 = vld [vmem:[%s627_s0 + $0x18] sm:$0xff]  ;;  %v27_v28 = vld [vmem:[%s626_s1 + $0x80] sm:$0xff] }
   0x8   :  { %v28_v29 = vld [vmem:[%s626_s1 + $0x88] sm:$0xff]  ;;  %v29_v30 = vld [vmem:[%s626_s1 + $0x90] sm:$0xff]  ;;  %v30_v33 = vld [vmem:[%s626_s1 + $0x98] sm:$0xff] }
   0x9   :  { %448 = vmatpush3.bf16.msra.mxu0 %v445_v5  ;;  %v474_v32 = vpack.c.bf16 %v28_v29, %v27_v28  ;;  %v477_v35 = vpack.c.bf16 %v30_v33, %v29_v30  ;;  %v591_v39 = vld [vmem:[%s626_s1 + $0xc0] sm:$0xff]  ;;  %v184_v28 = vsub.s32 2, %v585_v37  ;;  %v32_v36 = vld [vmem:[%s626_s1 + $0xa8] sm:$0xff] }
   0xa   :  { %450 = vmatprep.subr.bf16.mxu0 %v449_v8  ;;  %v43_v40 = vrot.slane %v591_v39, %v42_v38 }
   0xb   :  { %475 = vmatpush3.bf16.msra.mxu1 %v474_v32  ;;  %v185_v33 = vrot.slane %v591_v39, %v184_v28 }
   0xc   :  { %476 = vmatprep.subr.bf16.mxu1 %v490_v31 }
   0xd   :  { %452 = vmatpush3.bf16.msra.mxu0 %v449_v8 }
   0xe   :  { %454 = vmatprep.subr.bf16.mxu0 %v453_v12 }
   0xf   :  { %478 = vmatpush3.bf16.msra.mxu1 %v477_v35  ;;  %v31_v35 = vld [vmem:[%s626_s1 + $0xa0] sm:$0xff] }
  0x10   :  { %479 = vmatprep.subr.bf16.mxu1 %v490_v31 }
  0x11   :  { %456 = vmatpush3.bf16.msra.mxu0 %v453_v12 }
  0x12   :  { %458 = vmatprep.subr.bf16.mxu0 %v457_v15 }
  0x15   :  { %460 = vmatpush3.bf16.msra.mxu0 %v457_v15 }
  0x16   :  { %462 = vmatprep.subr.bf16.mxu0 %v461_v18 }
  0x19   :  { %464 = vmatpush3.bf16.msra.mxu0 %v461_v18 }
  0x1a   :  { %466 = vmatprep.subr.bf16.mxu0 %v465_v21 }
  0x1d   :  { %468 = vmatpush3.bf16.msra.mxu0 %v465_v21 }
  0x1e   :  { %470 = vmatprep.subr.bf16.mxu0 %v469_v24 }
  0x21   :  { %472 = vmatpush3.bf16.msra.mxu0 %v469_v24 }
  0x24   :  { %414 = vmatmul.mubr.f32.vlgmr.msra.gmra.mrb[0].mxu0 %v37_v25 }
  0x25   :  { %416 = vmatprep.mubr.f32.mxu0 %v38_v26 }
  0x28   :  { %417 = vmatmul.mubr.f32.gmra.mrb[2].mxu0 %v39_v27  ;;  %v179_v27 = vsub.s32 1, %v585_v37 }
  0x2a   :  { %v180_v29 = vrot.slane %v591_v39, %v179_v27 }
  0xf7   :  { %v415_v41 = vpop.f32.mrb[0].mxu0 }
  0xf8   :  { %v116_v42 = vadd.f32 %v415_v41, %v43_v40  ;;  %v110_v43 = vpop.f32.mrb[1].mxu0 }
  0xf9   :  { %v111_v44 = vadd.f32 %v110_v43, %v43_v40  ;;  %v34_v43 = vld [vmem:[%s626_s1 + $0xb8] sm:$0xff] }
  0xfa   :  { %v130_v45 = vmax.f32 %v116_v42, 0.0  ;;  %v33_v42 = vld [vmem:[%s626_s1 + $0xb0] sm:$0xff] }
  0xfb   :  { %v129_v46 = vmax.f32 %v111_v44, 0.0  ;;  %v418_v47 = vpop.f32.mrb[2].mxu0  ;;  %v483_v44 = vpack.c.bf16 %v34_v43, %v33_v42 }
  0xfc   :  { %v135_v48 = vsel %vm133_vm1, %v130_v45, -inf  ;;  %v126_v49 = vadd.f32 %v418_v47, %v43_v40  ;;  %v120_v50 = vpop.f32.mrb[3].mxu0  ;;  %v189_v45 = vsub.s32 3, %v585_v37 }
  0xfd   :  { %v134_v51 = vsel %vm133_vm1, %v129_v46, -inf  ;;  %v121_v52 = vadd.f32 %v120_v50, %v43_v40  ;;  %v480_v40 = vpack.c.bf16 %v32_v36, %v31_v35  ;;  %v269_v50 = vsub.s32 4, %v585_v37 }
  0xfe   :  { %v136_v53 = vmax.f32 %v134_v51, %v135_v48  ;;  %v132_v54 = vmax.f32 %v126_v49, 0.0  ;;  %v190_v46 = vrot.slane %v591_v39, %v189_v45 }
  0xff   :  { %v131_v55 = vmax.f32 %v121_v52, 0.0  ;;  %v270_v51 = vrot.slane %v591_v39, %v269_v50 }
 0x100   :  { %v137_v56 = vrot.slane %v136_v53, 4  ;;  %v144_v57 = vsel %vm133_vm1, %v132_v54, -inf }
 0x101   :  { %v143_v58 = vsel %vm133_vm1, %v131_v55, -inf }
 0x102   :  { %v138_v59 = vmax.f32 %v136_v53, %v137_v56  ;;  %v145_v60 = vmax.f32 %v143_v58, %v144_v57 }
 0x104   :  { %v139_v61 = vrot.slane %v138_v59, 2  ;;  %v146_v62 = vrot.slane %v145_v60, 4 }
 0x106   :  { %v140_v63 = vmax.f32 %v138_v59, %v139_v61  ;;  %v147_v0 = vmax.f32 %v145_v60, %v146_v62 }
 0x108   :  { %v148_v1 = vrot.slane %v147_v0, 2  ;;  %v141_v2 = vrot.slane %v140_v63, 1 }
 0x10a   :  { %v149_v3 = vmax.f32 %v147_v0, %v148_v1  ;;  %v142_v5 = vmax.f32 %v140_v63, %v141_v2 }
 0x10c   :  { %v150_v4 = vrot.slane %v149_v3, 1 }
 0x10e   :  { %v151_v6 = vmax.f32 %v149_v3, %v150_v4 }
 0x110   :  { %v153_v7 = vsel %vm152_vm2, %v142_v5, %v151_v6 }
 0x111   :  { %v155_v8 = vsel %vm154_vm3, %v153_v7, 0.0 }
 0x112   :  { %v156_v9 = vrot.slane %v155_v8, 4 }
 0x114   :  { %v157_v10 = vadd.f32 %v156_v9, %v155_v8 }
 0x116   :  { %v158_v11 = vrot.slane %v157_v10, 2 }
 0x118   :  { %v159_v12 = vadd.f32 %v158_v11, %v157_v10 }
 0x11a   :  { %v160_v13 = vrot.slane %v159_v12, 1 }
 0x11c   :  { %v161_v14 = vadd.f32 %v160_v13, %v159_v12 }
 0x11e   :  { %v163_v15 = vmul.f32 0.5, %v161_v14 }
 0x120   :  { %v164_v16 = vsub.f32 %v153_v7, %v163_v15 }
 0x122   :  { %v165_v17 = vmul.f32 %v164_v16, %v164_v16 }
 0x124   :  { %v166_v18 = vsel %vm154_vm3, %v165_v17, 0.0 }
 0x125   :  { %v167_v19 = vrot.slane %v166_v18, 4 }
 0x127   :  { %v168_v20 = vadd.f32 %v167_v19, %v166_v18 }
 0x129   :  { %v169_v21 = vrot.slane %v168_v20, 2 }
 0x12b   :  { %v170_v22 = vadd.f32 %v169_v21, %v168_v20 }
 0x12d   :  { %v171_v23 = vrot.slane %v170_v22, 1 }
 0x12f   :  { %v172_v24 = vadd.f32 %v171_v23, %v170_v22 }
 0x131   :  { %v173_v25 = vmul.f32 0.5, %v172_v24 }
 0x133   :  { %v174_v26 = vadd.f32 1e-05, %v173_v25 }
 0x135   :  { %488 = vrsqrt.f32 %v174_v26 }
 0x13f   :  { %v489_v30 = vpop.eup %488 }
 0x140   :  { %v176_v32 = vmul.f32 %v489_v30, %v164_v16 }
 0x142   :  { %v181_v38 = vmul.f32 %v180_v29, %v176_v32 }
 0x144   :  { %v186_v41 = vadd.f32 %v185_v33, %v181_v38 }
 0x146   :  { %428 = vmatmul.mubr.msk.f32.vlgmr.msra.gmra.mrb[0].mxu1 %vm133_vm1, %v186_v41 }
 0x147   :  { %481 = vmatpush3.bf16.msra.mxu1 %v480_v40  ;;  %438 = vmatprep.mubr.msk.f32.mxu1 %vm491_vm0, %v492_v34 }
 0x148   :  { %482 = vmatprep.subr.bf16.mxu1 %v490_v31 }
 0x14b   :  { %484 = vmatpush3.bf16.msra.mxu1 %v483_v44 }
 0x219   :  { %v260_v47 = vpop.f32.mrb[0].mxu1 }
 0x21a   :  { %v261_v48 = vadd.f32 %v260_v47, %v190_v46  ;;  %v429_v49 = vpop.f32.mrb[1].mxu1 }
 0x21c   :  { %v264_v34 = vmax.f32 %v261_v48, 0.0 }
 0x21e   :  { %v266_v31 = vsel %vm265_vm4, %v264_v34, 0.0 }
 0x21f   :  { %439 = vmatmul.mubr.msk.f32.vlgmr.msra.gmra.mrb[2].mxu1 %vm133_vm1, %v266_v31 }
 0x2f2   :  { %v340_v52 = vpop.f32.mrb[2].mxu1 }
 0x2f3   :  { %v341_v53 = vadd.f32 %v340_v52, %v270_v51  ;;  %v440_v54 = vpop.f32.mrb[3].mxu1 }
 0x2f5   :  { %344 = vst [vmem:[%s628_s2] sm:$0xff] %v341_v53 }

</bundles_post_ra>
